<compile_context>
chip_gen: v7x
topology: tpu7x:2x2x1
jax: 0.10.0
libtpu: 0.0.40
codegen_flags: <defaults>
</compile_context>

<pallas_src>
import jax
import jax.numpy as jnp
from jax.experimental import pallas as pl
from jax.experimental.pallas import tpu as pltpu

_LANE = 128


def _add_one_kernel(x_ref, o_ref):
    # Pure VPU elementwise op over the VMEM tile.
    o_ref[...] = x_ref[...] + jnp.asarray(1, dtype=o_ref.dtype)


def _sublane_for(dtype) -> int:
    # Sub-32-bit dtypes pack along sublanes: f32 -> 8 rows/vreg, bf16 -> 16, int8 -> 32.
    itemsize = jnp.dtype(dtype).itemsize
    return {4: 8, 2: 16, 1: 32}.get(itemsize, 8)


def _tpu_config():
    """Per-generation knobs: (single_block_max_bytes, target_block_bytes, vmem_limit_bytes, multi_core)."""
    kind = ""
    try:
        dev = jax.devices()[0]
        if dev.platform == "tpu":
            kind = dev.device_kind.lower()
    except Exception:
        pass
    if "v7" in kind:
        # 2 TCs/chip, ~3.2 TB/s HBM, 64 MiB physical VMEM: big blocks, explicit safe limit,
        # low single-block threshold so medium slabs still get a multi-step (sharded) grid.
        return (1 << 20, 8 << 20, 48 << 20, True)
    if "v6" in kind:
        # ~1.4 TB/s HBM: 4 MiB blocks (16 MiB double-buffered in+out) fit the 32 MiB default.
        return (4 << 20, 4 << 20, None, False)
    if "v5" in kind and ("lite" in kind or "5e" in kind):
        # ~820 GB/s HBM: 2 MiB blocks already put per-step overhead <10%; stays under the
        # 16 MiB scoped-VMEM default with no flag changes.
        return (4 << 20, 2 << 20, None, False)
    # Unknown / other generations: moderate blocks with an explicit, universally safe limit.
    return (4 << 20, 4 << 20, 32 << 20, False)


_SINGLE_BLOCK_MAX, _TARGET_BLOCK_BYTES, _VMEM_LIMIT, _MULTI_CORE = _tpu_config()


def _choose_slab(x):
    """Zero-copy (rows, cols) view of the flat data.

    Prefer a large lane-dense cols (multiple of 128) that divides the flat size
    exactly; otherwise keep the original trailing dim as full-width cols (masked
    partial-lane stores on the tail are cheaper than pad+slice HBM round trips).
    """
    n = x.size
    for c in (4096, 2048, 1024, 512, 256, 128):
        if n % c == 0:
            return n // c, c
    if x.ndim >= 1 and x.shape[-1] > 0:
        cols = x.shape[-1]
        return n // cols, cols
    return 1, n


def _forward_impl(x: jax.Array) -> jax.Array:
    """Equivalent of Mymodule.forward: x + 1, any shape/dtype."""
    if x.size == 0:
        return x + jnp.asarray(1, dtype=x.dtype)

    dtype = x.dtype
    itemsize = jnp.dtype(dtype).itemsize
    sublane = _sublane_for(dtype)

    rows, cols = _choose_slab(x)
    x2d = x.reshape(rows, cols)            # exact reshape: no pad, no extra HBM pass
    slab_bytes = rows * cols * itemsize

    kwargs = {}
    if slab_bytes > _SINGLE_BLOCK_MAX:
        # Tile rows at ~_TARGET_BLOCK_BYTES per block; ragged last block is masked by Pallas.
        tile_rows = (_TARGET_BLOCK_BYTES // (cols * itemsize)) // sublane * sublane
        tile_rows = max(sublane, tile_rows)
        if _MULTI_CORE:
            # Ensure at least one block per TensorCore on multi-core chips.
            half = pl.cdiv(pl.cdiv(rows, 2), sublane) * sublane
            tile_rows = min(tile_rows, max(sublane, half))
        if tile_rows >= rows:
            tile_rows = rows               # single full-extent block (always legal)
        grid_len = pl.cdiv(rows, tile_rows)
        if grid_len > 1:
            kwargs = dict(
                grid=(grid_len,),
                in_specs=[pl.BlockSpec((tile_rows, cols), lambda i: (i, 0))],
                out_specs=pl.BlockSpec((tile_rows, cols), lambda i: (i, 0)),
            )

    cp_kwargs = {}
    if "grid" in kwargs:
        cp_kwargs["dimension_semantics"] = ("parallel",)
    if _VMEM_LIMIT is not None:
        cp_kwargs["vmem_limit_bytes"] = _VMEM_LIMIT
    if cp_kwargs:
        kwargs["compiler_params"] = pltpu.CompilerParams(**cp_kwargs)

    out2d = pl.pallas_call(
        _add_one_kernel,
        out_shape=jax.ShapeDtypeStruct((rows, cols), dtype),
        **kwargs,
    )(x2d)
    return out2d.reshape(x.shape)


# jit so the (zero-copy) reshapes fuse around the kernel; no aliasing / donation assumed.
mymodule_forward = jax.jit(_forward_impl)


if __name__ == "__main__":
    key = jax.random.PRNGKey(0)
    k0, k1 = jax.random.split(key)

    # Primary case: small NCHW input consistent with the module's usage.
    x = jax.random.normal(k0, (2, 4, 16, 16), dtype=jnp.float32)
    out = jax.block_until_ready(mymodule_forward(x))
    assert out.shape == x.shape
    assert out.dtype == x.dtype
    assert jnp.allclose(out, x + 1.0, atol=1e-6, rtol=1e-6)

    # Larger case: flat size is 128-aligned but rows are not tile-aligned
    # -> exercises the tiled path with a ragged (masked) last row-block, no padding.
    x_big = jax.random.normal(k1, (4, 4, 512, 260), dtype=jnp.float32)
    out_big = jax.block_until_ready(mymodule_forward(x_big))
    assert out_big.shape == x_big.shape
    assert jnp.allclose(out_big, x_big + 1.0, atol=1e-6, rtol=1e-6)

    # Non-128-divisible flat size -> full-width trailing-dim slab, masked tail lanes.
    x_odd = jax.random.normal(k0, (3, 5, 7, 9), dtype=jnp.float32)
    out_odd = jax.block_until_ready(mymodule_forward(x_odd))
    assert out_odd.shape == x_odd.shape
    assert jnp.allclose(out_odd, x_odd + 1.0, atol=1e-6, rtol=1e-6)

    print("KERNEL_OK")
</pallas_src>

<mosaic_0001>
module attributes {stable_mosaic.version = 11 : i64} {
  func.func @_add_one_kernel(%arg0: memref<1x2048xf32, #tpu.memory_space<vmem>>, %arg1: memref<1x2048xf32, #tpu.memory_space<vmem>>) attributes {dimension_semantics = [], scalar_prefetch = 0 : i64, scratch_operands = 0 : i64, tpu.core_type = #tpu.core_type<tc>} {
    %c0 = arith.constant 0 : index
    %c0_0 = arith.constant 0 : index
    %0 = vector.load %arg0[%c0, %c0_0] : memref<1x2048xf32, #tpu.memory_space<vmem>>, vector<1x2048xf32>
    %cst = arith.constant 1.000000e+00 : f32
    %1 = vector.broadcast %cst : f32 to vector<1x2048xf32>
    %2 = arith.addf %0, %1 : vector<1x2048xf32>
    %c0_1 = arith.constant 0 : index
    %c0_2 = arith.constant 0 : index
    %3 = vector.load %arg1[%c0_1, %c0_2] : memref<1x2048xf32, #tpu.memory_space<vmem>>, vector<1x2048xf32>
    tpu.vector_store %arg1[%c0_1, %c0_2], %2 {strides = array<i32>} : memref<1x2048xf32, #tpu.memory_space<vmem>>, vector<1x2048xf32>,
    return
  }
}

</mosaic_0001>

<bundles_post_ra>
// kernel: _forward_impl.1
= control target key start
LH: loop header
LB: loop body
LE: loop exit
PB: predicated region body
PF: predicated region fallthrough
CT: control target
= control target key end

     0   :  { %s40_s0 = inlined_call_operand.vmem [shape: f32[1,2048], index: 0, kind: input, shape index: {}]   ;;  %s41_s1 = inlined_call_operand.vmem [shape: f32[1,2048], index: 1, kind: output, shape index: {}]  }
   0x1   :  { %v8_v0 = vld [vmem:[%s40_s0] sm:$0xff]  ;;  %v9_v1 = vld [vmem:[%s40_s0 + $0x8] sm:$0xff] }
   0x2   :  { %v10_v2 = vadd.f32 1.0, %v8_v0  ;;  %v11_v3 = vadd.f32 1.0, %v9_v1 }
   0x4   :  { %12 = vst [vmem:[%s41_s1] sm:$0xff] %v10_v2  ;;  %13 = vst [vmem:[%s41_s1 + $0x8] sm:$0xff] %v11_v3 }

</bundles_post_ra>
